<compile_context>
chip_gen: v6e
topology: v6e:2x2x1
jax: 0.10.0
libtpu: 0.0.40
codegen_flags: <defaults>
</compile_context>

<pallas_src>
import functools

import jax
import jax.numpy as jnp
import numpy as np
from jax import lax
from jax.experimental import pallas as pl
from jax.experimental.pallas import tpu as pltpu


def _lstm_kernel(x_ref, h0_ref, c0_ref, wih_ref, whh_ref, b_ref,
                 wlin_ref, blin_ref,
                 y_ref, hT_ref, cT_ref,
                 *, seq_len, hidden_size, recur_dtype):
    """Whole LSTM forward in one kernel invocation; recurrence unrolled over T."""
    H = hidden_size
    T = seq_len
    B = x_ref.shape[0]

    # ---- hoisted work (off the serial h->h critical path) -------------------
    # Input projection + bias for ALL timesteps in one batched matmul.
    # (Per-step it used to be an extra (B,I)@(I,4H) dot inside the recurrence.)
    gates_x = (jnp.einsum('bti,ig->btg', x_ref[...], wih_ref[...],
                          preferred_element_type=jnp.float32)
               + b_ref[...])                                     # (B, T, 4H)

    # Per-lane constants so the gate nonlinearity is ONE tanh pass:
    #   sigmoid(z) = 0.5 * tanh(0.5 * z) + 0.5
    #   i/f/o lanes: pre-scale 0.5, post-scale 0.5, post-bias 0.5
    #   g lanes    : pre-scale 1.0, post-scale 1.0, post-bias 0.0
    lane = lax.broadcasted_iota(jnp.int32, (1, 4 * H), 1)
    is_g_lane = (lane >= 2 * H) & (lane < 3 * H)
    gate_scale = jnp.where(is_g_lane, 1.0, 0.5).astype(jnp.float32)
    gate_bias = jnp.where(is_g_lane, 0.0, 0.5).astype(jnp.float32)

    # Recurrent weight (loop-invariant). Optionally bf16: MXU takes bf16
    # natively, f32 inputs are multi-pass emulated on v6e/v7x.
    w_hh = whh_ref[...].astype(recur_dtype)                      # (H, 4H)

    h = h0_ref[...]                                              # (B, H) f32
    c = c0_ref[...]                                              # (B, H) f32

    # ---- serial recurrence (fully unrolled; T small & static) ---------------
    # TODO(synk): if the bundle dump shows the per-step (B,H)@(H,4H) MXU
    # fill/drain dominating, hold w_hh resident via pltpu.matmul_push_rhs /
    # matmul_acc_lhs / matmul_pop (or a VPU outer-product form) instead of
    # re-issuing jnp.dot each unrolled step.
    for t in range(T):
        gates = gates_x[:, t, :] + jnp.dot(h.astype(recur_dtype), w_hh,
                                           preferred_element_type=jnp.float32)
        # Single EUP tanh over the whole lane-aligned (B, 4H) vector.
        act = gate_scale * jnp.tanh(gate_scale * gates) + gate_bias
        # TODO(synk): the shifted gate slices below are cross-lane moves; if
        # they ever land on VALU/ld-st slots, reorder weight columns (or use
        # pltpu.roll) so they ride the otherwise-idle XLU slots.
        i_g = act[:, 0 * H:1 * H]
        f_g = act[:, 1 * H:2 * H]
        g_g = act[:, 2 * H:3 * H]
        o_g = act[:, 3 * H:4 * H]
        c = f_g * c + i_g * g_g
        h = o_g * jnp.tanh(c)

    # ---- epilogue: Linear projection exactly once, on the last hidden state.
    # TODO(synk): if I/B ever scale, pad the output last dim to a multiple of
    # 128 for lane-dense stores and batch/pad B to >= 8 sublanes; irrelevant
    # at (2, 5).
    y_ref[...] = (jnp.dot(h, wlin_ref[...], preferred_element_type=jnp.float32)
                  + blin_ref[...])
    hT_ref[...] = h
    cT_ref[...] = c


def lstm_model_forward(x, hidden_cell, params, *, recurrent_dtype=jnp.float32):
    """x: (B, T, I) float32 (batch_first). Returns (y, (h_T, c_T)), y: (B, I).

    Set recurrent_dtype=jnp.bfloat16 on v6e/v7x for ~3x cheaper recurrent
    matmuls (relax correctness tolerance deliberately if you do).
    """
    B, T, I = x.shape
    h0, c0 = hidden_cell
    w_ih_T, w_hh_T, b_comb, w_lin_T, b_lin = params
    H = w_hh_T.shape[0]

    kernel = functools.partial(_lstm_kernel, seq_len=T, hidden_size=H,
                               recur_dtype=recurrent_dtype)

    y, h_T, c_T = pl.pallas_call(
        kernel,
        out_shape=(jax.ShapeDtypeStruct((B, I), jnp.float32),
                   jax.ShapeDtypeStruct((B, H), jnp.float32),
                   jax.ShapeDtypeStruct((B, H), jnp.float32)),
        # No grid: single invocation, every operand resident whole in VMEM
        # (total footprint is tens of KiB; fine even for v7x's 64 MiB VMEM).
        in_specs=[pl.BlockSpec(memory_space=pltpu.MemorySpace.VMEM)
                  for _ in range(8)],
        out_specs=(pl.BlockSpec(memory_space=pltpu.MemorySpace.VMEM),
                   pl.BlockSpec(memory_space=pltpu.MemorySpace.VMEM),
                   pl.BlockSpec(memory_space=pltpu.MemorySpace.VMEM)),
    )(x, h0, c0, w_ih_T, w_hh_T, b_comb, w_lin_T, b_lin)
    return y, (h_T, c_T)


def init_params(key, input_size, hidden_size):
    """Deterministic init matching PyTorch shapes (uniform(-1/sqrt(H), 1/sqrt(H)))."""
    k = 1.0 / np.sqrt(hidden_size)
    ks = jax.random.split(key, 6)
    H, I = hidden_size, input_size
    w_ih = jax.random.uniform(ks[0], (4 * H, I), jnp.float32, -k, k)   # weight_ih_l0
    w_hh = jax.random.uniform(ks[1], (4 * H, H), jnp.float32, -k, k)   # weight_hh_l0
    b_ih = jax.random.uniform(ks[2], (4 * H,), jnp.float32, -k, k)
    b_hh = jax.random.uniform(ks[3], (4 * H,), jnp.float32, -k, k)
    w_lin = jax.random.uniform(ks[4], (I, H), jnp.float32, -k, k)      # nn.Linear weight
    b_lin = jax.random.uniform(ks[5], (I,), jnp.float32, -k, k)

    # Pre-transpose / combine for the kernel (gate order [i, f, g, o]).
    w_ih_T = jnp.transpose(w_ih)                    # (I, 4H)
    w_hh_T = jnp.transpose(w_hh)                    # (H, 4H)
    b_comb = (b_ih + b_hh).reshape(1, 4 * H)        # (1, 4H)
    w_lin_T = jnp.transpose(w_lin)                  # (H, I)
    b_lin2 = b_lin.reshape(1, I)                    # (1, I)
    return (w_ih_T, w_hh_T, b_comb, w_lin_T, b_lin2)


def reference_forward(x, hidden_cell, params):
    """Pure-JAX reference of the same math (sanity check)."""
    w_ih_T, w_hh_T, b_comb, w_lin_T, b_lin = params
    H = w_hh_T.shape[0]
    h0, c0 = hidden_cell

    def cell(carry, x_t):
        h, c = carry
        gates = x_t @ w_ih_T + h @ w_hh_T + b_comb
        i = jax.nn.sigmoid(gates[:, 0 * H:1 * H])
        f = jax.nn.sigmoid(gates[:, 1 * H:2 * H])
        g = jnp.tanh(gates[:, 2 * H:3 * H])
        o = jax.nn.sigmoid(gates[:, 3 * H:4 * H])
        c_new = f * c + i * g
        h_new = o * jnp.tanh(c_new)
        return (h_new, c_new), None

    (h_T, c_T), _ = lax.scan(cell, (h0, c0), jnp.transpose(x, (1, 0, 2)))
    return h_T @ w_lin_T + b_lin, (h_T, c_T)


if __name__ == "__main__":
    # Small shapes consistent with the module: batch=2 (from the hidden_cell
    # shape in the constructor), seq=8, input_size (num_seqences)=5,
    # hidden_size=32 (4H = 128 lane-aligned).
    B, T, I, H = 2, 8, 5, 32

    key = jax.random.PRNGKey(0)
    kx, kp = jax.random.split(key)
    x = jax.random.normal(kx, (B, T, I), dtype=jnp.float32)
    params = init_params(kp, input_size=I, hidden_size=H)

    # Fresh state, matching the zeros in the PyTorch constructor. The final
    # (h_T, c_T) is returned so repeated calls can carry the state like
    # self.hidden_cell does.
    hidden_cell = (jnp.zeros((B, H), jnp.float32), jnp.zeros((B, H), jnp.float32))

    y, (h_T, c_T) = lstm_model_forward(x, hidden_cell, params)
    y = jax.block_until_ready(y)

    y_ref, (h_ref, c_ref) = reference_forward(x, hidden_cell, params)
    y_ref = jax.block_until_ready(y_ref)

    np.testing.assert_allclose(np.asarray(y), np.asarray(y_ref), rtol=1e-5, atol=1e-5)
    np.testing.assert_allclose(np.asarray(h_T), np.asarray(h_ref), rtol=1e-5, atol=1e-5)
    np.testing.assert_allclose(np.asarray(c_T), np.asarray(c_ref), rtol=1e-5, atol=1e-5)

    print("KERNEL_OK")
</pallas_src>

<mosaic_0001>
module attributes {stable_mosaic.version = 11 : i64} {
  func.func @_lstm_kernel(%arg0: memref<2x8x5xf32, #tpu.memory_space<vmem>>, %arg1: memref<2x32xf32, #tpu.memory_space<vmem>>, %arg2: memref<2x32xf32, #tpu.memory_space<vmem>>, %arg3: memref<5x128xf32, #tpu.memory_space<vmem>>, %arg4: memref<32x128xf32, #tpu.memory_space<vmem>>, %arg5: memref<1x128xf32, #tpu.memory_space<vmem>>, %arg6: memref<32x5xf32, #tpu.memory_space<vmem>>, %arg7: memref<1x5xf32, #tpu.memory_space<vmem>>, %arg8: memref<2x5xf32, #tpu.memory_space<vmem>>, %arg9: memref<2x32xf32, #tpu.memory_space<vmem>>, %arg10: memref<2x32xf32, #tpu.memory_space<vmem>>) attributes {dimension_semantics = [], scalar_prefetch = 0 : i64, scratch_operands = 0 : i64, tpu.core_type = #tpu.core_type<tc>} {
    %c0 = arith.constant 0 : index
    %c0_0 = arith.constant 0 : index
    %c0_1 = arith.constant 0 : index
    %0 = vector.load %arg0[%c0, %c0_0, %c0_1] : memref<2x8x5xf32, #tpu.memory_space<vmem>>, vector<2x8x5xf32>
    %c0_2 = arith.constant 0 : index
    %c0_3 = arith.constant 0 : index
    %1 = vector.load %arg3[%c0_2, %c0_3] : memref<5x128xf32, #tpu.memory_space<vmem>>, vector<5x128xf32>
    "tpu.trace_start"() <{level = 10 : i32, message = "bti,ig->btg"}> : () -> ()
    %cst = arith.constant dense<0.000000e+00> : vector<2x8x128xf32>
    %2 = tpu.matmul %0, %1, %cst {dimension_numbers = #tpu.dot_dimension_numbers<[2], [0], [0, 1], [1], [0, 0, 0, 1, 1, 1], [], []>} : vector<2x8x5xf32>, vector<5x128xf32>, vector<2x8x128xf32> -> vector<2x8x128xf32>
    "tpu.trace_stop"() : () -> ()
    %c0_4 = arith.constant 0 : index
    %c0_5 = arith.constant 0 : index
    %3 = vector.load %arg5[%c0_4, %c0_5] : memref<1x128xf32, #tpu.memory_space<vmem>>, vector<1x128xf32>
    %4 = vector.shape_cast %3 : vector<1x128xf32> to vector<1x1x128xf32>
    %5 = vector.broadcast %4 : vector<1x1x128xf32> to vector<2x8x128xf32>
    %6 = arith.addf %2, %5 : vector<2x8x128xf32>
    %7 = tpu.iota {dimensions = array<i32: 1>} : vector<1x128xi32>
    %c64_i32 = arith.constant 64 : i32
    %8 = vector.broadcast %c64_i32 : i32 to vector<1x128xi32>
    %9 = arith.cmpi sge, %7, %8 : vector<1x128xi32>
    %c96_i32 = arith.constant 96 : i32
    %10 = vector.broadcast %c96_i32 : i32 to vector<1x128xi32>
    %11 = arith.cmpi slt, %7, %10 : vector<1x128xi32>
    %12 = arith.andi %9, %11 : vector<1x128xi1>
    %cst_6 = arith.constant 1.000000e+00 : f32
    %cst_7 = arith.constant 5.000000e-01 : f32
    %13 = vector.broadcast %cst_6 : f32 to vector<1x128xf32>
    %14 = vector.broadcast %cst_7 : f32 to vector<1x128xf32>
    %15 = arith.select %12, %13, %14 : vector<1x128xi1>, vector<1x128xf32>
    %cst_8 = arith.constant 0.000000e+00 : f32
    %cst_9 = arith.constant 5.000000e-01 : f32
    %16 = vector.broadcast %cst_8 : f32 to vector<1x128xf32>
    %17 = vector.broadcast %cst_9 : f32 to vector<1x128xf32>
    %18 = arith.select %12, %16, %17 : vector<1x128xi1>, vector<1x128xf32>
    %c0_10 = arith.constant 0 : index
    %c0_11 = arith.constant 0 : index
    %19 = vector.load %arg4[%c0_10, %c0_11] : memref<32x128xf32, #tpu.memory_space<vmem>>, vector<32x128xf32>
    %c0_12 = arith.constant 0 : index
    %c0_13 = arith.constant 0 : index
    %20 = vector.load %arg1[%c0_12, %c0_13] : memref<2x32xf32, #tpu.memory_space<vmem>>, vector<2x32xf32>
    %c0_14 = arith.constant 0 : index
    %c0_15 = arith.constant 0 : index
    %21 = vector.load %arg2[%c0_14, %c0_15] : memref<2x32xf32, #tpu.memory_space<vmem>>, vector<2x32xf32>
    %22 = vector.extract_strided_slice %6 {offsets = [0, 0, 0], sizes = [2, 1, 128], strides = [1, 1, 1]} : vector<2x8x128xf32> to vector<2x1x128xf32>
    %23 = vector.shape_cast %22 : vector<2x1x128xf32> to vector<2x128xf32>
    %cst_16 = arith.constant dense<0.000000e+00> : vector<2x128xf32>
    %24 = tpu.matmul %20, %19, %cst_16 {dimension_numbers = #tpu.dot_dimension_numbers<[1], [0], [0], [1], [0, 0, 1, 1], [], []>} : vector<2x32xf32>, vector<32x128xf32>, vector<2x128xf32> -> vector<2x128xf32>
    %25 = arith.addf %23, %24 : vector<2x128xf32>
    %26 = vector.broadcast %15 : vector<1x128xf32> to vector<2x128xf32>
    %27 = arith.mulf %26, %25 : vector<2x128xf32>
    %28 = math.tanh %27 : vector<2x128xf32>
    %29 = vector.broadcast %15 : vector<1x128xf32> to vector<2x128xf32>
    %30 = arith.mulf %29, %28 : vector<2x128xf32>
    %31 = vector.broadcast %18 : vector<1x128xf32> to vector<2x128xf32>
    %32 = arith.addf %30, %31 : vector<2x128xf32>
    %33 = vector.extract_strided_slice %32 {offsets = [0, 0], sizes = [2, 32], strides = [1, 1]} : vector<2x128xf32> to vector<2x32xf32>
    %34 = vector.extract_strided_slice %32 {offsets = [0, 32], sizes = [2, 32], strides = [1, 1]} : vector<2x128xf32> to vector<2x32xf32>
    %35 = vector.extract_strided_slice %32 {offsets = [0, 64], sizes = [2, 32], strides = [1, 1]} : vector<2x128xf32> to vector<2x32xf32>
    %36 = vector.extract_strided_slice %32 {offsets = [0, 96], sizes = [2, 32], strides = [1, 1]} : vector<2x128xf32> to vector<2x32xf32>
    %37 = arith.mulf %34, %21 : vector<2x32xf32>
    %38 = arith.mulf %33, %35 : vector<2x32xf32>
    %39 = arith.addf %37, %38 : vector<2x32xf32>
    %40 = math.tanh %39 : vector<2x32xf32>
    %41 = arith.mulf %36, %40 : vector<2x32xf32>
    %42 = vector.extract_strided_slice %6 {offsets = [0, 1, 0], sizes = [2, 1, 128], strides = [1, 1, 1]} : vector<2x8x128xf32> to vector<2x1x128xf32>
    %43 = vector.shape_cast %42 : vector<2x1x128xf32> to vector<2x128xf32>
    %cst_17 = arith.constant dense<0.000000e+00> : vector<2x128xf32>
    %44 = tpu.matmul %41, %19, %cst_17 {dimension_numbers = #tpu.dot_dimension_numbers<[1], [0], [0], [1], [0, 0, 1, 1], [], []>} : vector<2x32xf32>, vector<32x128xf32>, vector<2x128xf32> -> vector<2x128xf32>
    %45 = arith.addf %43, %44 : vector<2x128xf32>
    %46 = vector.broadcast %15 : vector<1x128xf32> to vector<2x128xf32>
    %47 = arith.mulf %46, %45 : vector<2x128xf32>
    %48 = math.tanh %47 : vector<2x128xf32>
    %49 = vector.broadcast %15 : vector<1x128xf32> to vector<2x128xf32>
    %50 = arith.mulf %49, %48 : vector<2x128xf32>
    %51 = vector.broadcast %18 : vector<1x128xf32> to vector<2x128xf32>
    %52 = arith.addf %50, %51 : vector<2x128xf32>
    %53 = vector.extract_strided_slice %52 {offsets = [0, 0], sizes = [2, 32], strides = [1, 1]} : vector<2x128xf32> to vector<2x32xf32>
    %54 = vector.extract_strided_slice %52 {offsets = [0, 32], sizes = [2, 32], strides = [1, 1]} : vector<2x128xf32> to vector<2x32xf32>
    %55 = vector.extract_strided_slice %52 {offsets = [0, 64], sizes = [2, 32], strides = [1, 1]} : vector<2x128xf32> to vector<2x32xf32>
    %56 = vector.extract_strided_slice %52 {offsets = [0, 96], sizes = [2, 32], strides = [1, 1]} : vector<2x128xf32> to vector<2x32xf32>
    %57 = arith.mulf %54, %39 : vector<2x32xf32>
    %58 = arith.mulf %53, %55 : vector<2x32xf32>
    %59 = arith.addf %57, %58 : vector<2x32xf32>
    %60 = math.tanh %59 : vector<2x32xf32>
    %61 = arith.mulf %56, %60 : vector<2x32xf32>
    %62 = vector.extract_strided_slice %6 {offsets = [0, 2, 0], sizes = [2, 1, 128], strides = [1, 1, 1]} : vector<2x8x128xf32> to vector<2x1x128xf32>
    %63 = vector.shape_cast %62 : vector<2x1x128xf32> to vector<2x128xf32>
    %cst_18 = arith.constant dense<0.000000e+00> : vector<2x128xf32>
    %64 = tpu.matmul %61, %19, %cst_18 {dimension_numbers = #tpu.dot_dimension_numbers<[1], [0], [0], [1], [0, 0, 1, 1], [], []>} : vector<2x32xf32>, vector<32x128xf32>, vector<2x128xf32> -> vector<2x128xf32>
    %65 = arith.addf %63, %64 : vector<2x128xf32>
    %66 = vector.broadcast %15 : vector<1x128xf32> to vector<2x128xf32>
    %67 = arith.mulf %66, %65 : vector<2x128xf32>
    %68 = math.tanh %67 : vector<2x128xf32>
    %69 = vector.broadcast %15 : vector<1x128xf32> to vector<2x128xf32>
    %70 = arith.mulf %69, %68 : vector<2x128xf32>
    %71 = vector.broadcast %18 : vector<1x128xf32> to vector<2x128xf32>
    %72 = arith.addf %70, %71 : vector<2x128xf32>
    %73 = vector.extract_strided_slice %72 {offsets = [0, 0], sizes = [2, 32], strides = [1, 1]} : vector<2x128xf32> to vector<2x32xf32>
    %74 = vector.extract_strided_slice %72 {offsets = [0, 32], sizes = [2, 32], strides = [1, 1]} : vector<2x128xf32> to vector<2x32xf32>
    %75 = vector.extract_strided_slice %72 {offsets = [0, 64], sizes = [2, 32], strides = [1, 1]} : vector<2x128xf32> to vector<2x32xf32>
    %76 = vector.extract_strided_slice %72 {offsets = [0, 96], sizes = [2, 32], strides = [1, 1]} : vector<2x128xf32> to vector<2x32xf32>
    %77 = arith.mulf %74, %59 : vector<2x32xf32>
    %78 = arith.mulf %73, %75 : vector<2x32xf32>
    %79 = arith.addf %77, %78 : vector<2x32xf32>
    %80 = math.tanh %79 : vector<2x32xf32>
    %81 = arith.mulf %76, %80 : vector<2x32xf32>
    %82 = vector.extract_strided_slice %6 {offsets = [0, 3, 0], sizes = [2, 1, 128], strides = [1, 1, 1]} : vector<2x8x128xf32> to vector<2x1x128xf32>
    %83 = vector.shape_cast %82 : vector<2x1x128xf32> to vector<2x128xf32>
    %cst_19 = arith.constant dense<0.000000e+00> : vector<2x128xf32>
    %84 = tpu.matmul %81, %19, %cst_19 {dimension_numbers = #tpu.dot_dimension_numbers<[1], [0], [0], [1], [0, 0, 1, 1], [], []>} : vector<2x32xf32>, vector<32x128xf32>, vector<2x128xf32> -> vector<2x128xf32>
    %85 = arith.addf %83, %84 : vector<2x128xf32>
    %86 = vector.broadcast %15 : vector<1x128xf32> to vector<2x128xf32>
    %87 = arith.mulf %86, %85 : vector<2x128xf32>
    %88 = math.tanh %87 : vector<2x128xf32>
    %89 = vector.broadcast %15 : vector<1x128xf32> to vector<2x128xf32>
    %90 = arith.mulf %89, %88 : vector<2x128xf32>
    %91 = vector.broadcast %18 : vector<1x128xf32> to vector<2x128xf32>
    %92 = arith.addf %90, %91 : vector<2x128xf32>
    %93 = vector.extract_strided_slice %92 {offsets = [0, 0], sizes = [2, 32], strides = [1, 1]} : vector<2x128xf32> to vector<2x32xf32>
    %94 = vector.extract_strided_slice %92 {offsets = [0, 32], sizes = [2, 32], strides = [1, 1]} : vector<2x128xf32> to vector<2x32xf32>
    %95 = vector.extract_strided_slice %92 {offsets = [0, 64], sizes = [2, 32], strides = [1, 1]} : vector<2x128xf32> to vector<2x32xf32>
    %96 = vector.extract_strided_slice %92 {offsets = [0, 96], sizes = [2, 32], strides = [1, 1]} : vector<2x128xf32> to vector<2x32xf32>
    %97 = arith.mulf %94, %79 : vector<2x32xf32>
    %98 = arith.mulf %93, %95 : vector<2x32xf32>
    %99 = arith.addf %97, %98 : vector<2x32xf32>
    %100 = math.tanh %99 : vector<2x32xf32>
    %101 = arith.mulf %96, %100 : vector<2x32xf32>
    %102 = vector.extract_strided_slice %6 {offsets = [0, 4, 0], sizes = [2, 1, 128], strides = [1, 1, 1]} : vector<2x8x128xf32> to vector<2x1x128xf32>
    %103 = vector.shape_cast %102 : vector<2x1x128xf32> to vector<2x128xf32>
    %cst_20 = arith.constant dense<0.000000e+00> : vector<2x128xf32>
    %104 = tpu.matmul %101, %19, %cst_20 {dimension_numbers = #tpu.dot_dimension_numbers<[1], [0], [0], [1], [0, 0, 1, 1], [], []>} : vector<2x32xf32>, vector<32x128xf32>, vector<2x128xf32> -> vector<2x128xf32>
    %105 = arith.addf %103, %104 : vector<2x128xf32>
    %106 = vector.broadcast %15 : vector<1x128xf32> to vector<2x128xf32>
    %107 = arith.mulf %106, %105 : vector<2x128xf32>
    %108 = math.tanh %107 : vector<2x128xf32>
    %109 = vector.broadcast %15 : vector<1x128xf32> to vector<2x128xf32>
    %110 = arith.mulf %109, %108 : vector<2x128xf32>
    %111 = vector.broadcast %18 : vector<1x128xf32> to vector<2x128xf32>
    %112 = arith.addf %110, %111 : vector<2x128xf32>
    %113 = vector.extract_strided_slice %112 {offsets = [0, 0], sizes = [2, 32], strides = [1, 1]} : vector<2x128xf32> to vector<2x32xf32>
    %114 = vector.extract_strided_slice %112 {offsets = [0, 32], sizes = [2, 32], strides = [1, 1]} : vector<2x128xf32> to vector<2x32xf32>
    %115 = vector.extract_strided_slice %112 {offsets = [0, 64], sizes = [2, 32], strides = [1, 1]} : vector<2x128xf32> to vector<2x32xf32>
    %116 = vector.extract_strided_slice %112 {offsets = [0, 96], sizes = [2, 32], strides = [1, 1]} : vector<2x128xf32> to vector<2x32xf32>
    %117 = arith.mulf %114, %99 : vector<2x32xf32>
    %118 = arith.mulf %113, %115 : vector<2x32xf32>
    %119 = arith.addf %117, %118 : vector<2x32xf32>
    %120 = math.tanh %119 : vector<2x32xf32>
    %121 = arith.mulf %116, %120 : vector<2x32xf32>
    %122 = vector.extract_strided_slice %6 {offsets = [0, 5, 0], sizes = [2, 1, 128], strides = [1, 1, 1]} : vector<2x8x128xf32> to vector<2x1x128xf32>
    %123 = vector.shape_cast %122 : vector<2x1x128xf32> to vector<2x128xf32>
    %cst_21 = arith.constant dense<0.000000e+00> : vector<2x128xf32>
    %124 = tpu.matmul %121, %19, %cst_21 {dimension_numbers = #tpu.dot_dimension_numbers<[1], [0], [0], [1], [0, 0, 1, 1], [], []>} : vector<2x32xf32>, vector<32x128xf32>, vector<2x128xf32> -> vector<2x128xf32>
    %125 = arith.addf %123, %124 : vector<2x128xf32>
    %126 = vector.broadcast %15 : vector<1x128xf32> to vector<2x128xf32>
    %127 = arith.mulf %126, %125 : vector<2x128xf32>
    %128 = math.tanh %127 : vector<2x128xf32>
    %129 = vector.broadcast %15 : vector<1x128xf32> to vector<2x128xf32>
    %130 = arith.mulf %129, %128 : vector<2x128xf32>
    %131 = vector.broadcast %18 : vector<1x128xf32> to vector<2x128xf32>
    %132 = arith.addf %130, %131 : vector<2x128xf32>
    %133 = vector.extract_strided_slice %132 {offsets = [0, 0], sizes = [2, 32], strides = [1, 1]} : vector<2x128xf32> to vector<2x32xf32>
    %134 = vector.extract_strided_slice %132 {offsets = [0, 32], sizes = [2, 32], strides = [1, 1]} : vector<2x128xf32> to vector<2x32xf32>
    %135 = vector.extract_strided_slice %132 {offsets = [0, 64], sizes = [2, 32], strides = [1, 1]} : vector<2x128xf32> to vector<2x32xf32>
    %136 = vector.extract_strided_slice %132 {offsets = [0, 96], sizes = [2, 32], strides = [1, 1]} : vector<2x128xf32> to vector<2x32xf32>
    %137 = arith.mulf %134, %119 : vector<2x32xf32>
    %138 = arith.mulf %133, %135 : vector<2x32xf32>
    %139 = arith.addf %137, %138 : vector<2x32xf32>
    %140 = math.tanh %139 : vector<2x32xf32>
    %141 = arith.mulf %136, %140 : vector<2x32xf32>
    %142 = vector.extract_strided_slice %6 {offsets = [0, 6, 0], sizes = [2, 1, 128], strides = [1, 1, 1]} : vector<2x8x128xf32> to vector<2x1x128xf32>
    %143 = vector.shape_cast %142 : vector<2x1x128xf32> to vector<2x128xf32>
    %cst_22 = arith.constant dense<0.000000e+00> : vector<2x128xf32>
    %144 = tpu.matmul %141, %19, %cst_22 {dimension_numbers = #tpu.dot_dimension_numbers<[1], [0], [0], [1], [0, 0, 1, 1], [], []>} : vector<2x32xf32>, vector<32x128xf32>, vector<2x128xf32> -> vector<2x128xf32>
    %145 = arith.addf %143, %144 : vector<2x128xf32>
    %146 = vector.broadcast %15 : vector<1x128xf32> to vector<2x128xf32>
    %147 = arith.mulf %146, %145 : vector<2x128xf32>
    %148 = math.tanh %147 : vector<2x128xf32>
    %149 = vector.broadcast %15 : vector<1x128xf32> to vector<2x128xf32>
    %150 = arith.mulf %149, %148 : vector<2x128xf32>
    %151 = vector.broadcast %18 : vector<1x128xf32> to vector<2x128xf32>
    %152 = arith.addf %150, %151 : vector<2x128xf32>
    %153 = vector.extract_strided_slice %152 {offsets = [0, 0], sizes = [2, 32], strides = [1, 1]} : vector<2x128xf32> to vector<2x32xf32>
    %154 = vector.extract_strided_slice %152 {offsets = [0, 32], sizes = [2, 32], strides = [1, 1]} : vector<2x128xf32> to vector<2x32xf32>
    %155 = vector.extract_strided_slice %152 {offsets = [0, 64], sizes = [2, 32], strides = [1, 1]} : vector<2x128xf32> to vector<2x32xf32>
    %156 = vector.extract_strided_slice %152 {offsets = [0, 96], sizes = [2, 32], strides = [1, 1]} : vector<2x128xf32> to vector<2x32xf32>
    %157 = arith.mulf %154, %139 : vector<2x32xf32>
    %158 = arith.mulf %153, %155 : vector<2x32xf32>
    %159 = arith.addf %157, %158 : vector<2x32xf32>
    %160 = math.tanh %159 : vector<2x32xf32>
    %161 = arith.mulf %156, %160 : vector<2x32xf32>
    %162 = vector.extract_strided_slice %6 {offsets = [0, 7, 0], sizes = [2, 1, 128], strides = [1, 1, 1]} : vector<2x8x128xf32> to vector<2x1x128xf32>
    %163 = vector.shape_cast %162 : vector<2x1x128xf32> to vector<2x128xf32>
    %cst_23 = arith.constant dense<0.000000e+00> : vector<2x128xf32>
    %164 = tpu.matmul %161, %19, %cst_23 {dimension_numbers = #tpu.dot_dimension_numbers<[1], [0], [0], [1], [0, 0, 1, 1], [], []>} : vector<2x32xf32>, vector<32x128xf32>, vector<2x128xf32> -> vector<2x128xf32>
    %165 = arith.addf %163, %164 : vector<2x128xf32>
    %166 = vector.broadcast %15 : vector<1x128xf32> to vector<2x128xf32>
    %167 = arith.mulf %166, %165 : vector<2x128xf32>
    %168 = math.tanh %167 : vector<2x128xf32>
    %169 = vector.broadcast %15 : vector<1x128xf32> to vector<2x128xf32>
    %170 = arith.mulf %169, %168 : vector<2x128xf32>
    %171 = vector.broadcast %18 : vector<1x128xf32> to vector<2x128xf32>
    %172 = arith.addf %170, %171 : vector<2x128xf32>
    %173 = vector.extract_strided_slice %172 {offsets = [0, 0], sizes = [2, 32], strides = [1, 1]} : vector<2x128xf32> to vector<2x32xf32>
    %174 = vector.extract_strided_slice %172 {offsets = [0, 32], sizes = [2, 32], strides = [1, 1]} : vector<2x128xf32> to vector<2x32xf32>
    %175 = vector.extract_strided_slice %172 {offsets = [0, 64], sizes = [2, 32], strides = [1, 1]} : vector<2x128xf32> to vector<2x32xf32>
    %176 = vector.extract_strided_slice %172 {offsets = [0, 96], sizes = [2, 32], strides = [1, 1]} : vector<2x128xf32> to vector<2x32xf32>
    %177 = arith.mulf %174, %159 : vector<2x32xf32>
    %178 = arith.mulf %173, %175 : vector<2x32xf32>
    %179 = arith.addf %177, %178 : vector<2x32xf32>
    %180 = math.tanh %179 : vector<2x32xf32>
    %181 = arith.mulf %176, %180 : vector<2x32xf32>
    %c0_24 = arith.constant 0 : index
    %c0_25 = arith.constant 0 : index
    %182 = vector.load %arg6[%c0_24, %c0_25] : memref<32x5xf32, #tpu.memory_space<vmem>>, vector<32x5xf32>
    %cst_26 = arith.constant dense<0.000000e+00> : vector<2x5xf32>
    %183 = tpu.matmul %181, %182, %cst_26 {dimension_numbers = #tpu.dot_dimension_numbers<[1], [0], [0], [1], [0, 0, 1, 1], [], []>} : vector<2x32xf32>, vector<32x5xf32>, vector<2x5xf32> -> vector<2x5xf32>
    %c0_27 = arith.constant 0 : index
    %c0_28 = arith.constant 0 : index
    %184 = vector.load %arg7[%c0_27, %c0_28] : memref<1x5xf32, #tpu.memory_space<vmem>>, vector<1x5xf32>
    %185 = vector.broadcast %184 : vector<1x5xf32> to vector<2x5xf32>
    %186 = arith.addf %183, %185 : vector<2x5xf32>
    %c0_29 = arith.constant 0 : index
    %c0_30 = arith.constant 0 : index
    %187 = vector.load %arg8[%c0_29, %c0_30] : memref<2x5xf32, #tpu.memory_space<vmem>>, vector<2x5xf32>
    tpu.vector_store %arg8[%c0_29, %c0_30], %186 {strides = array<i32>} : memref<2x5xf32, #tpu.memory_space<vmem>>, vector<2x5xf32>,
    %c0_31 = arith.constant 0 : index
    %c0_32 = arith.constant 0 : index
    %188 = vector.load %arg9[%c0_31, %c0_32] : memref<2x32xf32, #tpu.memory_space<vmem>>, vector<2x32xf32>
    tpu.vector_store %arg9[%c0_31, %c0_32], %181 {strides = array<i32>} : memref<2x32xf32, #tpu.memory_space<vmem>>, vector<2x32xf32>,
    %c0_33 = arith.constant 0 : index
    %c0_34 = arith.constant 0 : index
    %189 = vector.load %arg10[%c0_33, %c0_34] : memref<2x32xf32, #tpu.memory_space<vmem>>, vector<2x32xf32>
    tpu.vector_store %arg10[%c0_33, %c0_34], %179 {strides = array<i32>} : memref<2x32xf32, #tpu.memory_space<vmem>>, vector<2x32xf32>,
    return
  }
}

</mosaic_0001>

<bundles_post_ra>
// kernel: tpu_custom_call.1
= control target key start
LH: loop header
LB: loop body
LE: loop exit
PB: predicated region body
PF: predicated region fallthrough
CT: control target
= control target key end

     0   :  { %16 = vsyncpa [#allocation3], 0  ;;  %vm51_vm0 = vcmask 1044480   ;;  %v1423_v3 = vmov 0.0   ;;  %vm44_vm1 = vcmask 39936   ;;  %s1733_s0 = inlined_call_operand.vmem [shape: f32[2,8,5], index: 0, kind: input, shape index: {}]   ;;  %s1734_s1 = inlined_call_operand.vmem [shape: f32[2,32], index: 1, kind: input, shape index: {}]   ;;  %s1735_s2 = inlined_call_operand.vmem [shape: f32[2,32], index: 2, kind: input, shape index: {}]   ;;  %s1736_s3 = inlined_call_operand.vmem [shape: f32[5,128], index: 3, kind: input, shape index: {}]   ;;  %s1737_s4 = inlined_call_operand.vmem [shape: f32[32,128], index: 4, kind: input, shape index: {}]   ;;  %s1738_s5 = inlined_call_operand.vmem [shape: f32[1,128], index: 5, kind: input, shape index: {}]   ;;  %s1739_s6 = inlined_call_operand.vmem [shape: f32[32,5], index: 6, kind: input, shape index: {}]   ;;  %s1740_s7 = inlined_call_operand.vmem [shape: f32[1,5], index: 7, kind: input, shape index: {}]   ;;  %s1741_s8 = inlined_call_operand.hbm [shape: f32[2,5], index: 8, kind: output, shape index: {0}]   ;;  %s1742_s9 = inlined_call_operand.hbm [shape: f32[2,32], index: 9, kind: output, shape index: {1}]   ;;  %s1743_s10 = inlined_call_operand.hbm [shape: f32[2,32], index: 10, kind: output, shape index: {2}]  }
   0x1   :  { %v1490_v0 = vld [vmem:[%s1737_s4 + $0x18] sm:$0xff]  ;;  %v36_v1 = vld [vmem:[%s1736_s3] sm:$0x1f]  ;;  %1219 = vmatprep.subr.mxu1 %v1423_v3  ;;  %v1502_v4 = vld [vmem:[%s1737_s4 + $0x10] sm:$0xff] }
   0x2   :  { %v34_v2 = vld [vmem:[%s1733_s0] sm:$0xff]  ;;  %1214 = vmatprep.subr.msk.mxu0 %vm51_vm0, %v36_v1  ;;  %v35_v5 = vld [vmem:[%s1733_s0 + $0x8] sm:$0xff]  ;;  %1220 = vmatpush3.msra.mxu1 %v1490_v0 }
   0x3   :  { %1215 = vmatpush3.msk.msra.mxu0 %vm51_vm0, %v36_v1 }
   0x4   :  { %17 = vsyncpa [#allocation5], 0  ;;  %1221 = vmatprep.subr.mxu1 %v1423_v3  ;;  %1216 = vmatprep.mubr.msk.f32.mxu0 %vm44_vm1, %v34_v2  ;;  %v1512_v6 = vld [vmem:[%s1737_s4 + $0x8] sm:$0xff]  ;;  %v1519_v7 = vld [vmem:[%s1737_s4] sm:$0xff]  ;;  %vm1424_vm2 = vmmov 0   ;;  %vm143_vm3 = vcmask 261120   ;;  %v130_v9 = vlaneseq }
   0x5   :  { %1222 = vmatpush3.msra.mxu1 %v1502_v4  ;;  %1217 = vmatmul.mubr.msk.f32.vlgmr.msra.gmra.mxu0 %vm44_vm1, %v35_v5  ;;  %v141_v8 = vld [vmem:[%s1734_s1] sm:$0x3]  ;;  %vm226_vm7 = vcmask 1041409   ;;  %v1425_v20 = vmov 0.5   ;;  %s1427_s29 = smov 32   ;;  %s1428_s17 = smov 96  }
   0x6   :  { %1223 = vmatprep.subr.mxu1 %v1423_v3  ;;  %1227 = vmatprep.mubr.msk.f32.mxu1 %vm1424_vm2, %v1423_v3  ;;  %v131_v11 = vand.u32 127, %v130_v9  ;;  %v1152_v12 = vld [vmem:[%s1738_s5] ss:$0 sm:$0xff]  ;;  %s1426_s5 = smov 64   ;;  %vm1104_vm8 = vcmask 254976  }
   0x7   :  { %1224 = vmatpush3.msra.mxu1 %v1512_v6  ;;  %1230 = vmatprep.subr.mxu0 %v1423_v3  ;;  %v142_v30 = vld [vmem:[%s1735_s2] sm:$0x3] }
   0x8   :  { %1225 = vmatprep.subr.mxu1 %v1423_v3  ;;  %1231 = vmatpush3.msra.mxu0 %v1490_v0  ;;  %vm132_vm4 = vcmp.ge.s32.totalorder %v131_v11, 64  ;;  %vm133_vm5 = vcmp.lt.s32.totalorder %v131_v11, 96 }
   0x9   :  { %1226 = vmatpush3.msra.mxu1 %v1519_v7  ;;  %1232 = vmatprep.subr.mxu0 %v1423_v3  ;;  %vm134_vm6 = vmand %vm132_vm4, %vm133_vm5 }
   0xa   :  { %1228 = vmatmul.mubr.msk.f32.vlgmr.msra.gmra.mxu1 %vm143_vm3, %v141_v8  ;;  %1233 = vmatpush3.msra.mxu0 %v1502_v4  ;;  %v1560_v21 = vsel %vm134_vm6, 1.0, %v1425_v20  ;;  %v1565_v27 = vsel %vm134_vm6, 0.0, %v1425_v20 }
   0xb   :  { %1234 = vmatprep.subr.mxu0 %v1423_v3  ;;  %1238 = vmatprep.mubr.msk.f32.mxu0 %vm1424_vm2, %v1423_v3 }
   0xc   :  { %1235 = vmatpush3.msra.mxu0 %v1512_v6  ;;  %1241 = vmatprep.subr.mxu1 %v1423_v3 }
   0xd   :  { %1236 = vmatprep.subr.mxu0 %v1423_v3  ;;  %1242 = vmatpush3.msra.mxu1 %v1490_v0 }
   0xe   :  { %1237 = vmatpush3.msra.mxu0 %v1519_v7  ;;  %1243 = vmatprep.subr.mxu1 %v1423_v3 }
   0xf   :  { %1244 = vmatpush3.msra.mxu1 %v1502_v4  ;;  %1249 = vmatprep.mubr.msk.f32.mxu1 %vm1424_vm2, %v1423_v3 }
  0x10   :  { %1245 = vmatprep.subr.mxu1 %v1423_v3  ;;  %1252 = vmatprep.subr.mxu0 %v1423_v3 }
  0x11   :  { %1246 = vmatpush3.msra.mxu1 %v1512_v6 }
  0x12   :  { %1247 = vmatprep.subr.mxu1 %v1423_v3 }
  0x13   :  { %1248 = vmatpush3.msra.mxu1 %v1519_v7 }
  0x14   :  { %1263 = vmatprep.subr.mxu1 %v1423_v3 }
  0xc5   :  { %v1218_v10 = vpop.f32.mrf.mxu0 }
  0xc6   :  { %v1555_v14 = vadd.f32 %v1218_v10, %v1152_v12 }
  0xc7   :  { %v121_v13 = vpop.f32.mrf.mxu0 }
  0xc8   :  { %v1557_v16 = vadd.f32 %v1152_v12, %v121_v13 }
  0xca   :  { %v213_v15 = vpop.f32.mrf.mxu1 }
  0xcb   :  { %v218_v17 = vrot.slane %v213_v15, 1  ;;  %v221_v22 = vadd.f32 %v213_v15, %v1557_v16 }
  0xcc   :  { %v1229_v18 = vpop.f32.mrf.mxu1 }
  0xcd   :  { %v222_v19 = vadd.f32 %v218_v17, %v1555_v14 }
  0xcf   :  { %v225_v23 = vrot.slane %v222_v19, 7 }
  0xd1   :  { %v227_v24 = vsel %vm226_vm7, %v225_v23, %v221_v22 }
  0xd2   :  { %v229_v25 = vmul.f32 %v227_v24, %v1560_v21 }
  0xd4   :  { %1327 = vtanh.f32 %v229_v25 }
  0xe1   :  { %v1328_v26 = vpop.eup %1327 }
  0xe2   :  { %v231_v28 = vmul.f32 %v1328_v26, %v1560_v21 }
  0xe4   :  { %v232_v29 = vadd.f32 %v231_v28, %v1565_v27 }
  0xe6   :  { %239 = vrot.lane.b32.xlu0 %v232_v29, %s1426_s5 }
  0xea   :  { %234 = vrot.lane.b32.xlu0 %v142_v30, %s1427_s29 }
 0x158   :  { %v240_v31 = vpop.permute.xlu0 %239 }
 0x159   :  { %v242_v32 = vmul.f32 %v240_v31, %v232_v29 }
 0x15b   :  { %244 = vrot.lane.b32.xlu1 %v242_v32, %s1427_s29 }
 0x15c   :  { %v235_v33 = vpop.permute.xlu0 %234 }
 0x15d   :  { %v237_v34 = vmul.f32 %v235_v33, %v232_v29 }
 0x1cd   :  { %v245_v35 = vpop.permute.xlu1 %244 }
 0x1ce   :  { %v247_v36 = vadd.f32 %v245_v35, %v237_v34 }
 0x1d0   :  { %1329 = vtanh.f32 %v247_v36 }
 0x1dd   :  { %v1330_v37 = vpop.eup %1329 }
 0x1de   :  { %250 = vrot.lane.b32.xlu1 %v1330_v37, %s1426_s5 }
 0x250   :  { %v251_v38 = vpop.permute.xlu1 %250 }
 0x251   :  { %v253_v39 = vmul.f32 %v251_v38, %v232_v29 }
 0x253   :  { %255 = vrot.lane.b32.xlu0 %v253_v39, %s1427_s29 }
 0x2c5   :  { %v256_v40 = vpop.permute.xlu0 %255 }
 0x2c6   :  { %1239 = vmatmul.mubr.msk.f32.vlgmr.msra.gmra.mxu0 %vm143_vm3, %v256_v40 }
 0x2c7   :  { %1253 = vmatpush3.msra.mxu0 %v1490_v0  ;;  %1260 = vmatprep.mubr.msk.f32.mxu0 %vm1424_vm2, %v1423_v3 }
 0x2c8   :  { %1254 = vmatprep.subr.mxu0 %v1423_v3 }
 0x2c9   :  { %1255 = vmatpush3.msra.mxu0 %v1502_v4 }
 0x2ca   :  { %1256 = vmatprep.subr.mxu0 %v1423_v3 }
 0x2cb   :  { %1257 = vmatpush3.msra.mxu0 %v1512_v6 }
 0x2cc   :  { %1258 = vmatprep.subr.mxu0 %v1423_v3 }
 0x2cd   :  { %1259 = vmatpush3.msra.mxu0 %v1519_v7 }
 0x2ce   :  { %1274 = vmatprep.subr.mxu0 %v1423_v3 }
 0x386   :  { %v325_v41 = vpop.f32.mrf.mxu0 }
 0x387   :  { %v330_v42 = vrot.slane %v325_v41, 7  ;;  %v334_v45 = vadd.f32 %v325_v41, %v1555_v14 }
 0x388   :  { %v1240_v43 = vpop.f32.mrf.mxu0 }
 0x389   :  { %v333_v44 = vadd.f32 %v330_v42, %v1557_v16 }
 0x38b   :  { %v337_v46 = vrot.slane %v333_v44, 1 }
 0x38d   :  { %v338_v47 = vsel %vm226_vm7, %v334_v45, %v337_v46 }
 0x38e   :  { %v340_v48 = vmul.f32 %v338_v47, %v1560_v21 }
 0x390   :  { %1331 = vtanh.f32 %v340_v48 }
 0x39d   :  { %v1332_v49 = vpop.eup %1331 }
 0x39e   :  { %v342_v50 = vmul.f32 %v1332_v49, %v1560_v21 }
 0x3a0   :  { %v343_v51 = vadd.f32 %v342_v50, %v1565_v27 }
 0x3a2   :  { %346 = vrot.lane.b32.xlu1 %v343_v51, %s1426_s5  ;;  %v344_v54 = vmul.f32 %v343_v51, %v247_v36 }
 0x414   :  { %v347_v52 = vpop.permute.xlu1 %346 }
 0x415   :  { %v349_v53 = vmul.f32 %v347_v52, %v343_v51 }
 0x417   :  { %351 = vrot.lane.b32.xlu0 %v349_v53, %s1427_s29 }
 0x489   :  { %v352_v55 = vpop.permute.xlu0 %351 }
 0x48a   :  { %v354_v56 = vadd.f32 %v352_v55, %v344_v54 }
 0x48c   :  { %1333 = vtanh.f32 %v354_v56 }
 0x499   :  { %v1334_v57 = vpop.eup %1333 }
 0x49a   :  { %357 = vrot.lane.b32.xlu1 %v1334_v57, %s1426_s5 }
 0x50c   :  { %v358_v58 = vpop.permute.xlu1 %357 }
 0x50d   :  { %v360_v59 = vmul.f32 %v358_v58, %v343_v51 }
 0x50f   :  { %362 = vrot.lane.b32.xlu0 %v360_v59, %s1427_s29 }
 0x581   :  { %v363_v60 = vpop.permute.xlu0 %362 }
 0x582   :  { %1250 = vmatmul.mubr.msk.f32.vlgmr.msra.gmra.mxu1 %vm143_vm3, %v363_v60 }
 0x583   :  { %1264 = vmatpush3.msra.mxu1 %v1490_v0  ;;  %1271 = vmatprep.mubr.msk.f32.mxu1 %vm1424_vm2, %v1423_v3 }
 0x584   :  { %1265 = vmatprep.subr.mxu1 %v1423_v3 }
 0x585   :  { %1266 = vmatpush3.msra.mxu1 %v1502_v4 }
 0x586   :  { %1267 = vmatprep.subr.mxu1 %v1423_v3 }
 0x587   :  { %1268 = vmatpush3.msra.mxu1 %v1512_v6 }
 0x588   :  { %1269 = vmatprep.subr.mxu1 %v1423_v3 }
 0x589   :  { %1270 = vmatpush3.msra.mxu1 %v1519_v7 }
 0x58a   :  { %1285 = vmatprep.subr.mxu1 %v1423_v3 }
 0x642   :  { %v432_v61 = vpop.f32.mrf.mxu1 }
 0x643   :  { %v437_v62 = vrot.slane %v432_v61, 6  ;;  %v438_v63 = vrot.slane %v432_v61, 7 }
 0x644   :  { %v1251_v1 = vpop.f32.mrf.mxu1 }
 0x645   :  { %v441_v2 = vadd.f32 %v437_v62, %v1557_v16  ;;  %v442_v5 = vadd.f32 %v438_v63, %v1555_v14 }
 0x647   :  { %v445_v8 = vrot.slane %v441_v2, 2  ;;  %v446_v9 = vrot.slane %v442_v5, 1 }
 0x649   :  { %v447_v10 = vsel %vm226_vm7, %v446_v9, %v445_v8 }
 0x64a   :  { %v449_v11 = vmul.f32 %v447_v10, %v1560_v21 }
 0x64c   :  { %1335 = vtanh.f32 %v449_v11 }
 0x659   :  { %v1336_v12 = vpop.eup %1335 }
 0x65a   :  { %v451_v13 = vmul.f32 %v1336_v12, %v1560_v21 }
 0x65c   :  { %v452_v15 = vadd.f32 %v451_v13, %v1565_v27 }
 0x65e   :  { %455 = vrot.lane.b32.xlu1 %v452_v15, %s1426_s5  ;;  %v453_v19 = vmul.f32 %v452_v15, %v354_v56 }
 0x6d0   :  { %v456_v17 = vpop.permute.xlu1 %455 }
 0x6d1   :  { %v458_v18 = vmul.f32 %v456_v17, %v452_v15 }
 0x6d3   :  { %460 = vrot.lane.b32.xlu0 %v458_v18, %s1427_s29 }
 0x745   :  { %v461_v20 = vpop.permute.xlu0 %460 }
 0x746   :  { %v463_v22 = vadd.f32 %v461_v20, %v453_v19 }
 0x748   :  { %1337 = vtanh.f32 %v463_v22 }
 0x755   :  { %v1338_v23 = vpop.eup %1337 }
 0x756   :  { %466 = vrot.lane.b32.xlu1 %v1338_v23, %s1426_s5 }
 0x7c8   :  { %v467_v24 = vpop.permute.xlu1 %466 }
 0x7c9   :  { %v469_v25 = vmul.f32 %v467_v24, %v452_v15 }
 0x7cb   :  { %471 = vrot.lane.b32.xlu0 %v469_v25, %s1427_s29 }
 0x83d   :  { %v472_v26 = vpop.permute.xlu0 %471 }
 0x83e   :  { %1261 = vmatmul.mubr.msk.f32.vlgmr.msra.gmra.mxu0 %vm143_vm3, %v472_v26 }
 0x83f   :  { %1275 = vmatpush3.msra.mxu0 %v1490_v0  ;;  %1282 = vmatprep.mubr.msk.f32.mxu0 %vm1424_vm2, %v1423_v3 }
 0x840   :  { %1276 = vmatprep.subr.mxu0 %v1423_v3 }
 0x841   :  { %1277 = vmatpush3.msra.mxu0 %v1502_v4 }
 0x842   :  { %1278 = vmatprep.subr.mxu0 %v1423_v3 }
 0x843   :  { %1279 = vmatpush3.msra.mxu0 %v1512_v6 }
 0x844   :  { %1280 = vmatprep.subr.mxu0 %v1423_v3 }
 0x845   :  { %1281 = vmatpush3.msra.mxu0 %v1519_v7 }
 0x846   :  { %1296 = vmatprep.subr.mxu0 %v1423_v3 }
 0x8fe   :  { %v541_v28 = vpop.f32.mrf.mxu0 }
 0x8ff   :  { %v546_v29 = vrot.slane %v541_v28, 5  ;;  %v547_v30 = vrot.slane %v541_v28, 6 }
 0x900   :  { %v1262_v31 = vpop.f32.mrf.mxu0 }
 0x901   :  { %v550_v32 = vadd.f32 %v546_v29, %v1557_v16  ;;  %v551_v33 = vadd.f32 %v547_v30, %v1555_v14 }
 0x903   :  { %v554_v34 = vrot.slane %v550_v32, 3  ;;  %v555_v35 = vrot.slane %v551_v33, 2 }
 0x905   :  { %v556_v36 = vsel %vm226_vm7, %v555_v35, %v554_v34 }
 0x906   :  { %v558_v37 = vmul.f32 %v556_v36, %v1560_v21 }
 0x908   :  { %1339 = vtanh.f32 %v558_v37 }
 0x915   :  { %v1340_v38 = vpop.eup %1339 }
 0x916   :  { %v560_v39 = vmul.f32 %v1340_v38, %v1560_v21 }
 0x918   :  { %v561_v40 = vadd.f32 %v560_v39, %v1565_v27 }
 0x91a   :  { %564 = vrot.lane.b32.xlu1 %v561_v40, %s1426_s5  ;;  %v562_v43 = vmul.f32 %v561_v40, %v463_v22 }
 0x98c   :  { %v565_v41 = vpop.permute.xlu1 %564 }
 0x98d   :  { %v567_v42 = vmul.f32 %v565_v41, %v561_v40 }
 0x98f   :  { %569 = vrot.lane.b32.xlu0 %v567_v42, %s1427_s29 }
 0xa01   :  { %v570_v44 = vpop.permute.xlu0 %569 }
 0xa02   :  { %v572_v45 = vadd.f32 %v570_v44, %v562_v43 }
 0xa04   :  { %1341 = vtanh.f32 %v572_v45 }
 0xa11   :  { %v1342_v46 = vpop.eup %1341 }
 0xa12   :  { %575 = vrot.lane.b32.xlu1 %v1342_v46, %s1426_s5 }
 0xa84   :  { %v576_v47 = vpop.permute.xlu1 %575 }
 0xa85   :  { %v578_v48 = vmul.f32 %v576_v47, %v561_v40 }
 0xa87   :  { %580 = vrot.lane.b32.xlu0 %v578_v48, %s1427_s29 }
 0xaf9   :  { %v581_v49 = vpop.permute.xlu0 %580 }
 0xafa   :  { %1272 = vmatmul.mubr.msk.f32.vlgmr.msra.gmra.mxu1 %vm143_vm3, %v581_v49 }
 0xafb   :  { %1286 = vmatpush3.msra.mxu1 %v1490_v0  ;;  %1293 = vmatprep.mubr.msk.f32.mxu1 %vm1424_vm2, %v1423_v3 }
 0xafc   :  { %1287 = vmatprep.subr.mxu1 %v1423_v3 }
 0xafd   :  { %1288 = vmatpush3.msra.mxu1 %v1502_v4 }
 0xafe   :  { %1289 = vmatprep.subr.mxu1 %v1423_v3 }
 0xaff   :  { %1290 = vmatpush3.msra.mxu1 %v1512_v6 }
 0xb00   :  { %1291 = vmatprep.subr.mxu1 %v1423_v3 }
 0xb01   :  { %1292 = vmatpush3.msra.mxu1 %v1519_v7 }
 0xb02   :  { %1307 = vmatprep.subr.mxu1 %v1423_v3 }
 0xbba   :  { %v650_v50 = vpop.f32.mrf.mxu1 }
 0xbbb   :  { %v655_v51 = vrot.slane %v650_v50, 4  ;;  %v656_v52 = vrot.slane %v650_v50, 5 }
 0xbbc   :  { %v1273_v53 = vpop.f32.mrf.mxu1 }
 0xbbd   :  { %v659_v54 = vadd.f32 %v655_v51, %v1557_v16  ;;  %v660_v55 = vadd.f32 %v656_v52, %v1555_v14 }
 0xbbf   :  { %v663_v56 = vrot.slane %v659_v54, 4  ;;  %v664_v57 = vrot.slane %v660_v55, 3 }
 0xbc1   :  { %v665_v58 = vsel %vm226_vm7, %v664_v57, %v663_v56 }
 0xbc2   :  { %v667_v59 = vmul.f32 %v665_v58, %v1560_v21 }
 0xbc4   :  { %1343 = vtanh.f32 %v667_v59 }
 0xbd1   :  { %v1344_v60 = vpop.eup %1343 }
 0xbd2   :  { %v669_v61 = vmul.f32 %v1344_v60, %v1560_v21 }
 0xbd4   :  { %v670_v62 = vadd.f32 %v669_v61, %v1565_v27 }
 0xbd6   :  { %673 = vrot.lane.b32.xlu1 %v670_v62, %s1426_s5  ;;  %v671_v2 = vmul.f32 %v670_v62, %v572_v45 }
 0xc48   :  { %v674_v63 = vpop.permute.xlu1 %673 }
 0xc49   :  { %v676_v1 = vmul.f32 %v674_v63, %v670_v62 }
 0xc4b   :  { %678 = vrot.lane.b32.xlu0 %v676_v1, %s1427_s29 }
 0xcbd   :  { %v679_v5 = vpop.permute.xlu0 %678 }
 0xcbe   :  { %v681_v8 = vadd.f32 %v679_v5, %v671_v2 }
 0xcc0   :  { %1345 = vtanh.f32 %v681_v8 }
 0xccd   :  { %v1346_v9 = vpop.eup %1345 }
 0xcce   :  { %684 = vrot.lane.b32.xlu1 %v1346_v9, %s1426_s5 }
 0xd40   :  { %v685_v10 = vpop.permute.xlu1 %684 }
 0xd41   :  { %v687_v11 = vmul.f32 %v685_v10, %v670_v62 }
 0xd43   :  { %689 = vrot.lane.b32.xlu0 %v687_v11, %s1427_s29 }
 0xdb5   :  { %v690_v12 = vpop.permute.xlu0 %689 }
 0xdb6   :  { %1283 = vmatmul.mubr.msk.f32.vlgmr.msra.gmra.mxu0 %vm143_vm3, %v690_v12 }
 0xdb7   :  { %1297 = vmatpush3.msra.mxu0 %v1490_v0  ;;  %1304 = vmatprep.mubr.msk.f32.mxu0 %vm1424_vm2, %v1423_v3 }
 0xdb8   :  { %1298 = vmatprep.subr.mxu0 %v1423_v3 }
 0xdb9   :  { %1299 = vmatpush3.msra.mxu0 %v1502_v4 }
 0xdba   :  { %1300 = vmatprep.subr.mxu0 %v1423_v3 }
 0xdbb   :  { %1301 = vmatpush3.msra.mxu0 %v1512_v6 }
 0xdbc   :  { %1302 = vmatprep.subr.mxu0 %v1423_v3 }
 0xdbd   :  { %1303 = vmatpush3.msra.mxu0 %v1519_v7 }
 0xe76   :  { %v759_v13 = vpop.f32.mrf.mxu0 }
 0xe77   :  { %v764_v15 = vrot.slane %v759_v13, 3  ;;  %v765_v17 = vrot.slane %v759_v13, 4 }
 0xe78   :  { %v1284_v18 = vpop.f32.mrf.mxu0 }
 0xe79   :  { %v768_v0 = vadd.f32 %v764_v15, %v1557_v16  ;;  %v769_v19 = vadd.f32 %v765_v17, %v1555_v14  ;;  %v1018_v15 = vld [vmem:[%s1739_s6 + $0x18] sm:$0xff]  ;;  %v1015_v17 = vld [vmem:[%s1739_s6] sm:$0xff] }
 0xe7b   :  { %v772_v20 = vrot.slane %v768_v0, 5  ;;  %v773_v22 = vrot.slane %v769_v19, 4 }
 0xe7d   :  { %v774_v4 = vsel %vm226_vm7, %v773_v22, %v772_v20 }
 0xe7e   :  { %v776_v23 = vmul.f32 %v774_v4, %v1560_v21 }
 0xe80   :  { %1347 = vtanh.f32 %v776_v23 }
 0xe8d   :  { %v1348_v6 = vpop.eup %1347 }
 0xe8e   :  { %v778_v24 = vmul.f32 %v1348_v6, %v1560_v21 }
 0xe90   :  { %v779_v7 = vadd.f32 %v778_v24, %v1565_v27 }
 0xe92   :  { %782 = vrot.lane.b32.xlu1 %v779_v7, %s1426_s5  ;;  %v780_v28 = vmul.f32 %v779_v7, %v681_v8 }
 0xf04   :  { %v783_v25 = vpop.permute.xlu1 %782 }
 0xf05   :  { %v785_v26 = vmul.f32 %v783_v25, %v779_v7 }
 0xf07   :  { %787 = vrot.lane.b32.xlu0 %v785_v26, %s1427_s29 }
 0xf79   :  { %v788_v29 = vpop.permute.xlu0 %787 }
 0xf7a   :  { %v790_v30 = vadd.f32 %v788_v29, %v780_v28 }
 0xf7c   :  { %1349 = vtanh.f32 %v790_v30 }
 0xf89   :  { %v1350_v31 = vpop.eup %1349 }
 0xf8a   :  { %793 = vrot.lane.b32.xlu1 %v1350_v31, %s1426_s5 }
 0xffc   :  { %v794_v32 = vpop.permute.xlu1 %793 }
 0xffd   :  { %v796_v33 = vmul.f32 %v794_v32, %v779_v7 }
 0xfff   :  { %798 = vrot.lane.b32.xlu0 %v796_v33, %s1427_s29 }
0x1071   :  { %v799_v34 = vpop.permute.xlu0 %798 }
0x1072   :  { %1294 = vmatmul.mubr.msk.f32.vlgmr.msra.gmra.mxu1 %vm143_vm3, %v799_v34 }
0x1073   :  { %1315 = vmatprep.mubr.msk.f32.mxu1 %vm1424_vm2, %v1423_v3  ;;  %1308 = vmatpush3.msra.mxu1 %v1018_v15 }
0x1074   :  { %1309 = vmatprep.subr.mxu1 %v1423_v3 }
0x1132   :  { %v868_v35 = vpop.f32.mrf.mxu1 }
0x1133   :  { %v873_v36 = vrot.slane %v868_v35, 2  ;;  %v874_v37 = vrot.slane %v868_v35, 3 }
0x1134   :  { %v1295_v38 = vpop.f32.mrf.mxu1 }
0x1135   :  { %v877_v39 = vadd.f32 %v873_v36, %v1557_v16  ;;  %v878_v40 = vadd.f32 %v874_v37, %v1555_v14 }
0x1137   :  { %v881_v41 = vrot.slane %v877_v39, 6  ;;  %v882_v42 = vrot.slane %v878_v40, 5 }
0x1139   :  { %v883_v43 = vsel %vm226_vm7, %v882_v42, %v881_v41 }
0x113a   :  { %v885_v44 = vmul.f32 %v883_v43, %v1560_v21 }
0x113c   :  { %1351 = vtanh.f32 %v885_v44 }
0x1149   :  { %v1352_v45 = vpop.eup %1351 }
0x114a   :  { %v887_v46 = vmul.f32 %v1352_v45, %v1560_v21 }
0x114c   :  { %v888_v47 = vadd.f32 %v887_v46, %v1565_v27 }
0x114e   :  { %891 = vrot.lane.b32.xlu1 %v888_v47, %s1426_s5  ;;  %v889_v50 = vmul.f32 %v888_v47, %v790_v30 }
0x11c0   :  { %v892_v48 = vpop.permute.xlu1 %891 }
0x11c1   :  { %v894_v49 = vmul.f32 %v892_v48, %v888_v47 }
0x11c3   :  { %896 = vrot.lane.b32.xlu0 %v894_v49, %s1427_s29 }
0x1235   :  { %v897_v51 = vpop.permute.xlu0 %896 }
0x1236   :  { %v899_v52 = vadd.f32 %v897_v51, %v889_v50 }
0x1238   :  { %1353 = vtanh.f32 %v899_v52 }
0x1245   :  { %v1354_v53 = vpop.eup %1353 }
0x1246   :  { %902 = vrot.lane.b32.xlu1 %v1354_v53, %s1426_s5 }
0x12b8   :  { %v903_v54 = vpop.permute.xlu1 %902 }
0x12b9   :  { %v905_v55 = vmul.f32 %v903_v54, %v888_v47 }
0x12bb   :  { %907 = vrot.lane.b32.xlu0 %v905_v55, %s1427_s29 }
0x132d   :  { %v908_v56 = vpop.permute.xlu0 %907 }
0x132e   :  { %1305 = vmatmul.mubr.msk.f32.vlgmr.msra.gmra.mxu0 %vm143_vm3, %v908_v56 }
0x13ee   :  { %v977_v57 = vpop.f32.mrf.mxu0 }
0x13ef   :  { %v982_v58 = vrot.slane %v977_v57, 1  ;;  %v983_v59 = vrot.slane %v977_v57, 2 }
0x13f0   :  { %v1306_v60 = vpop.f32.mrf.mxu0 }
0x13f1   :  { %v986_v61 = vadd.f32 %v982_v58, %v1557_v16  ;;  %v987_v62 = vadd.f32 %v983_v59, %v1555_v14 }
0x13f3   :  { %v990_v63 = vrot.slane %v986_v61, 7  ;;  %v991_v1 = vrot.slane %v987_v62, 6 }
0x13f5   :  { %v992_v2 = vsel %vm226_vm7, %v991_v1, %v990_v63 }
0x13f6   :  { %v994_v5 = vmul.f32 %v992_v2, %v1560_v21 }
0x13f8   :  { %1355 = vtanh.f32 %v994_v5 }
0x1405   :  { %v1356_v8 = vpop.eup %1355 }
0x1406   :  { %v996_v9 = vmul.f32 %v1356_v8, %v1560_v21  ;;  %v1017_v21 = vld [vmem:[%s1739_s6 + $0x10] sm:$0xff] }
0x1407   :  { %1310 = vmatpush3.msra.mxu1 %v1017_v21 }
0x1408   :  { %v997_v10 = vadd.f32 %v996_v9, %v1565_v27  ;;  %v1016_v27 = vld [vmem:[%s1739_s6 + $0x8] sm:$0xff]  ;;  %1311 = vmatprep.subr.mxu1 %v1423_v3  ;;  %s1429_s6 = smov [#allocation4]  }
0x1409   :  { %1312 = vmatpush3.msra.mxu1 %v1016_v27  ;;  %s1127_s18 = sshll.u32 %s1429_s6, 4  ;;  %s1128_s18 = int_to_ptr.vmem [resolvable:$true] %s1127_s18 }
0x140a   :  { %1000 = vrot.lane.b32.xlu1 %v997_v10, %s1426_s5  ;;  %v998_v16 = vmul.f32 %v997_v10, %v899_v52  ;;  %1313 = vmatprep.subr.mxu1 %v1423_v3  ;;  %s1359_s19 = scalar_lea.vmem %s1128_s18, 32  ;;  %p1364_p1 = scmp.lt.s32.totalorder %s1128_s18, %s1128_s18 }
0x140b   :  { %1314 = vmatpush3.msra.mxu1 %v1015_v17  ;;  %p1360_p0 = scmp.ne.s32.totalorder %s1128_s18, %s1359_s19  ;;  %p1365_p2 = scmp.lt.s32.totalorder %s1359_s19, %s1359_s19 }
0x140d   :  { %p1366_p3 = por %p1365_p2, %p1364_p1 }
0x140f   :  { %p1367_p4 = pnand %p1366_p3, %p1360_p0 }
0x147c   :  { %v1001_v11 = vpop.permute.xlu1 %1000 }
0x147d   :  { %v1003_v12 = vmul.f32 %v1001_v11, %v997_v10 }
0x147f   :  { %1005 = vrot.lane.b32.xlu0 %v1003_v12, %s1427_s29 }
0x14f1   :  { %v1006_v14 = vpop.permute.xlu0 %1005 }
0x14f2   :  { %v1008_v13 = vadd.f32 %v1006_v14, %v998_v16 }
0x14f4   :  { %1357 = vtanh.f32 %v1008_v13 }
0x1501   :  { %v1358_v18 = vpop.eup %1357 }
0x1502   :  { %1011 = vrot.lane.b32.xlu1 %v1358_v18, %s1426_s5 }
0x1506   :  { %1107 = vrot.lane.b32.xlu1 %v1008_v13, %s1428_s17 }
0x1574   :  { %v1012_v0 = vpop.permute.xlu1 %1011 }
0x1575   :  { %v1014_v19 = vmul.f32 %v1012_v0, %v997_v10 }
0x1577   :  { %1027 = vrot.lane.b32.xlu0 %v1014_v19, %s1427_s29 }
0x1578   :  { %v1108_v20 = vpop.permute.xlu1 %1107 }
0x1579   :  { %1110 = vst.msk [vmem:[#allocation6] sm:$0x3] %vm1104_vm8, %v1108_v20 }
0x15e9   :  { %v1028_v22 = vpop.permute.xlu0 %1027 }
0x15ea   :  { %1105 = vst.msk [vmem:[#allocation4] sm:$0x3] %vm1104_vm8, %v1028_v22  ;;  %1316 = vmatmul.mubr.msk.f32.vlgmr.msra.gmra.mxu1 %vm143_vm3, %v1028_v22 }
0x15eb   :  { %1370 = shalt.err (!%p1367_p4)
}
0x15ec   :  { %1130 = dma.vmem_to_hbm [thread:$0]  %s1128_s18, 32, %s1742_s9, [#allocation5]  }
0x15ed   :  { %s1430_s22 = smov [#allocation6]  }
0x15ee   :  { %s1137_s3 = sshll.u32 %s1430_s22, 4  ;;  %s1138_s3 = int_to_ptr.vmem [resolvable:$true] %s1137_s3 }
0x15ef   :  { %s1379_s23 = scalar_lea.vmem %s1138_s3, 32  ;;  %p1384_p6 = scmp.lt.s32.totalorder %s1138_s3, %s1138_s3 }
0x15f0   :  { %p1380_p5 = scmp.ne.s32.totalorder %s1138_s3, %s1379_s23  ;;  %p1385_p7 = scmp.lt.s32.totalorder %s1379_s23, %s1379_s23 }
0x15f2   :  { %p1386_p8 = por %p1385_p7, %p1384_p6 }
0x15f4   :  { %p1387_p9 = pnand %p1386_p8, %p1380_p5 }
0x15f6   :  { %1390 = shalt.err (!%p1387_p9)
}
0x15f7   :  { %1140 = dma.vmem_to_hbm [thread:$0]  %s1138_s3, 32, %s1743_s10, [#allocation5]   ;;  %v1164_v3 = vld [vmem:[%s1740_s7] ss:$0 sm:$0xff]  ;;  %vm1101_vm9 = vcmask 33792  }
0x15f8   :  { %s1431_s1 = smov [#allocation2]  }
0x15f9   :  { %s1117_s9 = sshll.u32 %s1431_s1, 4  ;;  %s1118_s9 = int_to_ptr.vmem [resolvable:$true] %s1117_s9 }
0x15fa   :  { %s1399_s4 = scalar_lea.vmem %s1118_s9, 32  ;;  %p1404_p11 = scmp.lt.s32.totalorder %s1118_s9, %s1118_s9 }
0x15fb   :  { %p1400_p10 = scmp.ne.s32.totalorder %s1118_s9, %s1399_s4  ;;  %p1405_p12 = scmp.lt.s32.totalorder %s1399_s4, %s1399_s4 }
0x15fd   :  { %p1406_p13 = por %p1405_p12, %p1404_p11 }
0x15ff   :  { %p1407_p0 = pnand %p1406_p13, %p1400_p10 }
0x16aa   :  { %v1097_v4 = vpop.f32.mrf.mxu1 }
0x16ab   :  { %v1098_v23 = vadd.f32 %v1164_v3, %v1097_v4 }
0x16ac   :  { %v1317_v6 = vpop.f32.mrf.mxu1 }
0x16ad   :  { %1102 = vst.msk [vmem:[#allocation2] sm:$0x3] %vm1101_vm9, %v1098_v23 }
0x16ae   :  { %1410 = shalt.err (!%p1407_p0)
}
0x16af   :  { %1120 = dma.vmem_to_hbm [thread:$0]  %s1118_s9, 32, %s1741_s8, [#allocation3]  }
0x16b0   :  { %1419 = dma.done.wait [#allocation3], 32  }
0x16b1   :  { %1420 = vsyncadd [#allocation3], 4294967264 }
0x16b2   :  { %1421 = dma.done.wait [#allocation5], 64  }
0x16b3   :  { %1422 = vsyncadd [#allocation5], 4294967232 }
0x16b4   :  { %1150 = vsyncpa [#allocation3], 1 }
0x16b5   :  { %1151 = vsyncpa [#allocation5], 1 }

</bundles_post_ra>
